<compile_context>
chip_gen: v7x
topology: tpu7x:2x2x1
jax: 0.10.0
libtpu: 0.0.40
codegen_flags: <defaults>
</compile_context>

<pallas_src>
import functools

import jax
import jax.numpy as jnp
from jax import lax
from jax.experimental import pallas as pl
from jax.experimental.pallas import tpu as pltpu


def q_value_kernel(x_ref, w1_ref, b1_ref, w2_ref, b2_ref, w3_ref, b3_ref,
                   out_ref, *, act_dtype):
    # x tile: (TM, n_obs) f32 -> cast to bf16 (no transpose of the big tile).
    x = x_ref[...].astype(jnp.bfloat16)                        # (TM, n_obs)

    # Layer 1: contract over n_obs (minor dim of BOTH operands) -> (L1, TM).
    # Batch lands on the lane axis for the rest of the kernel.
    acc1 = lax.dot_general(
        w1_ref[...], x, (((1,), (1,)), ((), ())),
        preferred_element_type=jnp.float32)                    # (L1, TM) f32
    h1 = jnp.tanh((acc1 + b1_ref[...]).astype(act_dtype))      # (L1, TM)

    # Layer 2: standard MXU matmul -> (L2, TM).
    acc2 = jnp.dot(w2_ref[...], h1.astype(jnp.bfloat16),
                   preferred_element_type=jnp.float32)         # (L2, TM) f32
    h2 = jnp.tanh((acc2 + b2_ref[...]).astype(act_dtype))      # (L2, TM)

    # Value head (out_features == 1): VPU multiply + sublane reduce (XLU),
    # rather than an MXU matmul with a single useful output lane.
    value = jnp.sum(w3_ref[...] * h2.astype(jnp.float32), axis=0,
                    keepdims=True) + b3_ref[...]               # (1, TM) f32
    out_ref[...] = value.astype(out_ref.dtype)


def _bf16_activation_ok():
    # v6e / v7x have bf16 VPU + EUP; v5e (and older) do not.
    try:
        kind = jax.devices()[0].device_kind.lower()
    except Exception:
        return False
    return ("v6" in kind) or ("v7" in kind)


def _pick_batch_tile(B, tm_max):
    if B <= 128:
        # Single block covering the full batch dim (full-dim blocks are exempt
        # from the (8, 128) divisibility rule).
        return B, 1
    # Multiple of 128 (lane-dense output block), capped at tm_max; aim for at
    # least 2 tiles so v7x's two TensorCores can both get work.
    tm = min(tm_max, max(128, pl.cdiv(B, 2 * 128) * 128))
    return tm, pl.cdiv(B, tm)


def q_value_forward(x, w1, b1, w2, b2, w3, b3, *, tm_max=8192):
    """3-layer MLP forward (PyTorch nn.Linear weight layout).

    x  : (B, n_observations) f32
    w1 : (L1, n_observations), b1 : (L1,)
    w2 : (L2, L1),             b2 : (L2,)
    w3 : (1, L2),              b3 : (1,)
    returns (B, 1) f32
    """
    B, n_obs = x.shape
    L1 = w1.shape[0]
    L2 = w2.shape[0]

    tm, n_tiles = _pick_batch_tile(B, tm_max)

    # bf16 matmul operands (f32 accumulation in-kernel); biases as f32
    # (out, 1) columns; w3 stays f32 as an (L2, 1) column for the VPU head.
    w1b = w1.astype(jnp.bfloat16)
    w2b = w2.astype(jnp.bfloat16)
    b1c = b1.reshape(L1, 1).astype(jnp.float32)
    b2c = b2.reshape(L2, 1).astype(jnp.float32)
    w3c = w3.reshape(L2, 1).astype(jnp.float32)
    b3c = b3.reshape(1, 1).astype(jnp.float32)

    act_dtype = jnp.bfloat16 if _bf16_activation_ok() else jnp.float32

    resident = lambda a: pl.BlockSpec(a.shape, lambda i: (0, 0))

    out = pl.pallas_call(
        functools.partial(q_value_kernel, act_dtype=act_dtype),
        out_shape=jax.ShapeDtypeStruct((1, B), jnp.float32),
        grid=(n_tiles,),
        in_specs=[
            pl.BlockSpec((tm, n_obs), lambda i: (i, 0)),   # streamed batch tile
            resident(w1b), resident(b1c),
            resident(w2b), resident(b2c),
            resident(w3c), resident(b3c),
        ],
        out_specs=pl.BlockSpec((1, tm), lambda i: (0, i)),  # lane-dense output
        compiler_params=pltpu.CompilerParams(
            dimension_semantics=("parallel",),
            vmem_limit_bytes=32 * 1024 * 1024,
        ),
    )(x, w1b, b1c, w2b, b2c, w3c, b3c)

    # (1, B) -> (B, 1): same element order; kept to preserve module semantics.
    return out.reshape(B, 1)


def init_params(key, n_observations, layer1=16, layer2=16):
    """Deterministic init mimicking nn.Linear's uniform(-1/sqrt(fan_in), +)."""
    ks = jax.random.split(key, 6)

    def linear(kw, kb, fan_in, fan_out):
        bound = 1.0 / jnp.sqrt(fan_in)
        w = jax.random.uniform(kw, (fan_out, fan_in), jnp.float32, -bound, bound)
        b = jax.random.uniform(kb, (fan_out,), jnp.float32, -bound, bound)
        return w, b

    w1, b1 = linear(ks[0], ks[1], n_observations, layer1)
    w2, b2 = linear(ks[2], ks[3], layer1, layer2)
    w3, b3 = linear(ks[4], ks[5], layer2, 1)
    return w1, b1, w2, b2, w3, b3


def reference_forward(x, w1, b1, w2, b2, w3, b3):
    h1 = jnp.tanh(x @ w1.T + b1)
    h2 = jnp.tanh(h1 @ w2.T + b2)
    return h2 @ w3.T + b3


if __name__ == "__main__":
    key = jax.random.PRNGKey(0)
    k_x, k_x2, k_p = jax.random.split(key, 3)

    n_observations = 32
    params = init_params(k_p, n_observations, layer1=16, layer2=16)

    # Small batch: single full-dim block.
    x_small = jax.random.normal(k_x, (8, n_observations), jnp.float32)
    out_small = jax.block_until_ready(q_value_forward(x_small, *params))
    ref_small = reference_forward(x_small, *params)
    assert out_small.shape == (8, 1)
    assert jnp.allclose(out_small, ref_small, atol=3e-2, rtol=3e-2), (
        float(jnp.max(jnp.abs(out_small - ref_small))))

    # Larger, non-aligned batch: exercises the multi-tile grid + ragged tail
    # (no wrapper-side padding copy).
    x_big = jax.random.normal(k_x2, (2500, n_observations), jnp.float32)
    out_big = jax.block_until_ready(q_value_forward(x_big, *params))
    ref_big = reference_forward(x_big, *params)
    assert out_big.shape == (2500, 1)
    assert jnp.allclose(out_big, ref_big, atol=3e-2, rtol=3e-2), (
        float(jnp.max(jnp.abs(out_big - ref_big))))

    print("KERNEL_OK")
</pallas_src>

<mosaic_0001>
module attributes {stable_mosaic.version = 11 : i64} {
  func.func @q_value_kernel(%arg0: i32, %arg1: memref<8x32xf32, #tpu.memory_space<vmem>>, %arg2: memref<16x32xbf16, #tpu.memory_space<vmem>>, %arg3: memref<16x1xf32, #tpu.memory_space<vmem>>, %arg4: memref<16x16xbf16, #tpu.memory_space<vmem>>, %arg5: memref<16x1xf32, #tpu.memory_space<vmem>>, %arg6: memref<16x1xf32, #tpu.memory_space<vmem>>, %arg7: memref<1x1xf32, #tpu.memory_space<vmem>>, %arg8: memref<1x8xf32, #tpu.memory_space<vmem>>) attributes {dimension_semantics = [#tpu.dimension_semantics<parallel>], iteration_bounds = array<i64: 1>, scalar_prefetch = 0 : i64, scratch_operands = 0 : i64, tpu.core_type = #tpu.core_type<tc>, window_params = [{transform_indices = @transform_0, window_bounds = array<i64: 8, 32>}, {pipeline_mode = #tpu.pipeline_mode<synchronous>, transform_indices = @transform_1, window_bounds = array<i64: 16, 32>}, {pipeline_mode = #tpu.pipeline_mode<synchronous>, transform_indices = @transform_2, window_bounds = array<i64: 16, 1>}, {pipeline_mode = #tpu.pipeline_mode<synchronous>, transform_indices = @transform_3, window_bounds = array<i64: 16, 16>}, {pipeline_mode = #tpu.pipeline_mode<synchronous>, transform_indices = @transform_4, window_bounds = array<i64: 16, 1>}, {pipeline_mode = #tpu.pipeline_mode<synchronous>, transform_indices = @transform_5, window_bounds = array<i64: 16, 1>}, {pipeline_mode = #tpu.pipeline_mode<synchronous>, transform_indices = @transform_6, window_bounds = array<i64: 1, 1>}, {transform_indices = @transform_7, window_bounds = array<i64: 1, 8>}]} {
    %c0 = arith.constant 0 : index
    %c0_0 = arith.constant 0 : index
    %0 = vector.load %arg1[%c0, %c0_0] : memref<8x32xf32, #tpu.memory_space<vmem>>, vector<8x32xf32>
    %1 = arith.truncf %0 : vector<8x32xf32> to vector<8x32xbf16>
    %c0_1 = arith.constant 0 : index
    %c0_2 = arith.constant 0 : index
    %2 = vector.load %arg2[%c0_1, %c0_2] : memref<16x32xbf16, #tpu.memory_space<vmem>>, vector<16x32xbf16>
    %cst = arith.constant dense<0.000000e+00> : vector<16x8xf32>
    %3 = tpu.matmul %2, %1, %cst {dimension_numbers = #tpu.dot_dimension_numbers<[1], [1], [0], [0], [0, 0, 1, 0], [], []>} : vector<16x32xbf16>, vector<8x32xbf16>, vector<16x8xf32> -> vector<16x8xf32>
    %c0_3 = arith.constant 0 : index
    %c0_4 = arith.constant 0 : index
    %4 = vector.load %arg3[%c0_3, %c0_4] : memref<16x1xf32, #tpu.memory_space<vmem>>, vector<16x1xf32>
    %5 = vector.broadcast %4 : vector<16x1xf32> to vector<16x8xf32>
    %6 = arith.addf %3, %5 : vector<16x8xf32>
    %7 = math.tanh %6 : vector<16x8xf32>
    %c0_5 = arith.constant 0 : index
    %c0_6 = arith.constant 0 : index
    %8 = vector.load %arg4[%c0_5, %c0_6] : memref<16x16xbf16, #tpu.memory_space<vmem>>, vector<16x16xbf16>
    %9 = arith.truncf %7 : vector<16x8xf32> to vector<16x8xbf16>
    %cst_7 = arith.constant dense<0.000000e+00> : vector<16x8xf32>
    %10 = tpu.matmul %8, %9, %cst_7 {dimension_numbers = #tpu.dot_dimension_numbers<[1], [0], [0], [1], [0, 0, 1, 1], [], []>} : vector<16x16xbf16>, vector<16x8xbf16>, vector<16x8xf32> -> vector<16x8xf32>
    %c0_8 = arith.constant 0 : index
    %c0_9 = arith.constant 0 : index
    %11 = vector.load %arg5[%c0_8, %c0_9] : memref<16x1xf32, #tpu.memory_space<vmem>>, vector<16x1xf32>
    %12 = vector.broadcast %11 : vector<16x1xf32> to vector<16x8xf32>
    %13 = arith.addf %10, %12 : vector<16x8xf32>
    %14 = math.tanh %13 : vector<16x8xf32>
    %c0_10 = arith.constant 0 : index
    %c0_11 = arith.constant 0 : index
    %15 = vector.load %arg6[%c0_10, %c0_11] : memref<16x1xf32, #tpu.memory_space<vmem>>, vector<16x1xf32>
    %16 = vector.broadcast %15 : vector<16x1xf32> to vector<16x8xf32>
    %17 = arith.mulf %16, %14 : vector<16x8xf32>
    %cst_12 = arith.constant dense<0.000000e+00> : vector<8xf32>
    %18 = vector.multi_reduction <add>, %17, %cst_12 [0] : vector<16x8xf32> to vector<8xf32>
    %19 = vector.shape_cast %18 : vector<8xf32> to vector<1x8xf32>
    %c0_13 = arith.constant 0 : index
    %c0_14 = arith.constant 0 : index
    %20 = vector.load %arg7[%c0_13, %c0_14] : memref<1x1xf32, #tpu.memory_space<vmem>>, vector<1x1xf32>
    %21 = vector.broadcast %20 : vector<1x1xf32> to vector<1x8xf32>
    %22 = arith.addf %19, %21 : vector<1x8xf32>
    %c0_15 = arith.constant 0 : index
    %c0_16 = arith.constant 0 : index
    %23 = vector.load %arg8[%c0_15, %c0_16] : memref<1x8xf32, #tpu.memory_space<vmem>>, vector<1x8xf32>
    tpu.vector_store %arg8[%c0_15, %c0_16], %22 {strides = array<i32>} : memref<1x8xf32, #tpu.memory_space<vmem>>, vector<1x8xf32>,
    return
  }
  func.func @transform_0(%arg0: i32) -> (i32, i32) {
    %c0_i32 = arith.constant 0 : i32
    %c0_i32_0 = arith.constant 0 : i32
    return %arg0, %c0_i32 : i32, i32
  }
  func.func @transform_1(%arg0: i32) -> (i32, i32) {
    %c0_i32 = arith.constant 0 : i32
    %c0_i32_0 = arith.constant 0 : i32
    %c0_i32_1 = arith.constant 0 : i32
    return %c0_i32, %c0_i32_0 : i32, i32
  }
  func.func @transform_2(%arg0: i32) -> (i32, i32) {
    %c0_i32 = arith.constant 0 : i32
    %c0_i32_0 = arith.constant 0 : i32
    %c0_i32_1 = arith.constant 0 : i32
    return %c0_i32, %c0_i32_0 : i32, i32
  }
  func.func @transform_3(%arg0: i32) -> (i32, i32) {
    %c0_i32 = arith.constant 0 : i32
    %c0_i32_0 = arith.constant 0 : i32
    %c0_i32_1 = arith.constant 0 : i32
    return %c0_i32, %c0_i32_0 : i32, i32
  }
  func.func @transform_4(%arg0: i32) -> (i32, i32) {
    %c0_i32 = arith.constant 0 : i32
    %c0_i32_0 = arith.constant 0 : i32
    %c0_i32_1 = arith.constant 0 : i32
    return %c0_i32, %c0_i32_0 : i32, i32
  }
  func.func @transform_5(%arg0: i32) -> (i32, i32) {
    %c0_i32 = arith.constant 0 : i32
    %c0_i32_0 = arith.constant 0 : i32
    %c0_i32_1 = arith.constant 0 : i32
    return %c0_i32, %c0_i32_0 : i32, i32
  }
  func.func @transform_6(%arg0: i32) -> (i32, i32) {
    %c0_i32 = arith.constant 0 : i32
    %c0_i32_0 = arith.constant 0 : i32
    %c0_i32_1 = arith.constant 0 : i32
    return %c0_i32, %c0_i32_0 : i32, i32
  }
  func.func @transform_7(%arg0: i32) -> (i32, i32) {
    %c0_i32 = arith.constant 0 : i32
    %c0_i32_0 = arith.constant 0 : i32
    return %c0_i32, %arg0 : i32, i32
  }
}

</mosaic_0001>

<bundles_post_ra>
// kernel: tpu_custom_call.1
= control target key start
LH: loop header
LB: loop body
LE: loop exit
PB: predicated region body
PF: predicated region fallthrough
CT: control target
= control target key end

     0   :  { %s367_s0 = inlined_call_operand.vmem [shape: f32[8,32], index: 0, kind: input, shape index: {}]   ;;  %s368_s1 = inlined_call_operand.vmem [shape: bf16[16,32], index: 1, kind: input, shape index: {}]   ;;  %s369_s2 = inlined_call_operand.vmem [shape: f32[16,1], index: 2, kind: input, shape index: {}]   ;;  %s370_s3 = inlined_call_operand.vmem [shape: bf16[16,16], index: 3, kind: input, shape index: {}]   ;;  %s371_s4 = inlined_call_operand.vmem [shape: f32[16,1], index: 4, kind: input, shape index: {}]   ;;  %s372_s5 = inlined_call_operand.vmem [shape: f32[16,1], index: 5, kind: input, shape index: {}]   ;;  %s373_s6 = inlined_call_operand.<no memory space> [shape: f32[1,1], index: 6, kind: input, shape index: {}]   ;;  %s374_s7 = inlined_call_operand.hbm [shape: f32[1,8], index: 7, kind: output, shape index: {}]  }
   0x1   :  { %v12_v0 = vstv %s373_s6 }
   0x2   :  { %13 = vst [vmem:[#allocation2] sm:$0x1] %v12_v0 }
   0x3   :  { %v30_v1 = vld [vmem:[%s367_s0] sm:$0xff]  ;;  %vm51_vm0 = vcmask 261120   ;;  %v279_v2 = vmov 0.0   ;;  %vm280_vm1 = vmmov 0   ;;  %v281_v5 = vmov 0   ;;  %v35_v7 = vld [vmem:[%s369_s2 + $0x8] sm:$0xff] }
   0x4   :  { %227 = vmatprep.subr.bf16.mxu0 %v279_v2  ;;  %v31_v3 = vpack.c.bf16 %v30_v1, %v30_v1  ;;  %229 = vmatprep.mubr.msk.bf16.mxu0 %vm280_vm1, %v279_v2  ;;  %v34_v4 = vld [vmem:[%s369_s2] sm:$0xff] }
   0x5   :  { %243 = vset.pattern.permute.xlu0 %v281_v5  ;;  %233 = vmatprep.subr.bf16.mxu1 %v279_v2 }
   0x6   :  { %v56_v6 = vsel %vm51_vm0, %v31_v3, 0  ;;  %38 = vperm.xlu0 %243, %v34_v4   ;;  %235 = vmatprep.mubr.msk.bf16.mxu1 %vm280_vm1, %v279_v2 }
   0x7   :  { %228 = vmatpush3.bf16.xpose.msra.mxu0 %v56_v6  ;;  %244 = vset.pattern.permute.xlu1 %v281_v5 }
   0x8   :  { %14 = vsyncpa [#allocation4], 0  ;;  %v245_v8 = vld [vmem:[%s368_s1] sm:$0xff]   ;;  %v105_v12 = vld [vmem:[%s371_s4 + $0x8] sm:$0xff]  ;;  %vm121_vm2 = vcmask 130048   ;;  %vm182_vm3 = vcmask 64512   ;;  %v198_v42 = vlaneseq }
   0x9   :  { %v168_v9 = vld [vmem:[%s372_s5] sm:$0xff]  ;;  %v169_v13 = vld [vmem:[%s372_s5 + $0x8] sm:$0xff]  ;;  %vm203_vm4 = vcmask 57344  }
   0xa   :  { %43 = vperm.xlu0 %243, %v35_v7   ;;  %v192_v10 = vld [vmem:[#allocation2] sm:$0x1]  ;;  %v199_v45 = vshrl.u32 %v198_v42, 7 }
   0xb   :  { %v104_v11 = vld [vmem:[%s371_s4] sm:$0xff] }
   0xc   :  { %108 = vperm.xlu1 %244, %v104_v11   ;;  %v246_v25 = vld [vmem:[%s370_s3] sm:$0xff]   ;;  %v200_v48 = vsub.s32 0, %v199_v45  ;;  %s282_s3 = smov [#allocation3]  }
   0xd   :  { %s211_s5 = sshll.u32 %s282_s3, 4  ;;  %s212_s5 = int_to_ptr.vmem [resolvable:$true] %s211_s5 }
   0xe   :  { %230 = vmatmul.mubr.msk.bf16.vlgmr.msra.gmra.mrb[0].mxu0 %vm51_vm0, %v245_v8  ;;  %172 = vperm.xlu0 %243, %v168_v9   ;;  %s255_s16 = scalar_lea.vmem %s212_s5, 16  ;;  %s259_s17 = scalar_lea.vmem %s212_s5, 32 }
   0xf   :  { %p256_p0 = scmp.ne.s32.totalorder %s212_s5, %s255_s16  ;;  %p260_p1 = scmp.lt.s32.totalorder %s212_s5, %s212_s5 }
  0x10   :  { %113 = vperm.xlu1 %244, %v105_v12   ;;  %p261_p2 = scmp.lt.s32.totalorder %s259_s17, %s255_s16 }
  0x12   :  { %195 = vperm.xlu0 %243, %v192_v10   ;;  %p262_p3 = por %p261_p2, %p260_p1 }
  0x14   :  { %177 = vperm.xlu1 %244, %v169_v13   ;;  %p263_p4 = pnand %p262_p3, %p256_p0 }
  0x85   :  { %v39_v14 = vpop.permute.xlu0 %38 }
  0x89   :  { %v44_v18 = vpop.permute.xlu0 %43 }
  0x8b   :  { %v109_v26 = vpop.permute.xlu1 %108 }
  0x8d   :  { %v173_v35 = vpop.permute.xlu0 %172 }
  0x8f   :  { %v114_v30 = vpop.permute.xlu1 %113 }
  0x91   :  { %v196_v50 = vpop.permute.xlu0 %195 }
  0x92   :  { %v201_v52 = vrot.slane %v196_v50, %v200_v48 }
  0x93   :  { %v178_v38 = vpop.permute.xlu1 %177 }
  0xe1   :  { %v92_v15 = vpop.f32.mrb[0].mxu0 }
  0xe2   :  { %v93_v16 = vadd.f32 %v92_v15, %v39_v14  ;;  %v231_v17 = vpop.f32.mrb[1].mxu0 }
  0xe3   :  { %v95_v19 = vpop.f32.mrb[2].mxu0 }
  0xe4   :  { %v96_v20 = vadd.f32 %v95_v19, %v44_v18  ;;  %v232_v21 = vpop.f32.mrb[3].mxu0  ;;  %247 = vtanh.f32 %v93_v16 }
  0xe6   :  { %249 = vtanh.f32 %v96_v20 }
  0xee   :  { %v248_v22 = vpop.eup %247 }
  0xf0   :  { %v250_v23 = vpop.eup %249 }
  0xf1   :  { %v103_v24 = vpack.c.bf16 %v250_v23, %v248_v22 }
  0xf3   :  { %234 = vmatpush3.bf16.msra.mxu1 %v103_v24 }
  0xf6   :  { %236 = vmatmul.mubr.msk.bf16.vlgmr.msra.gmra.mrb[0].mxu1 %vm121_vm2, %v246_v25 }
 0x1c9   :  { %v159_v27 = vpop.f32.mrb[0].mxu1 }
 0x1ca   :  { %v160_v28 = vadd.f32 %v159_v27, %v109_v26  ;;  %v237_v29 = vpop.f32.mrb[1].mxu1 }
 0x1cb   :  { %v162_v31 = vpop.f32.mrb[2].mxu1 }
 0x1cc   :  { %251 = vtanh.f32 %v160_v28  ;;  %v163_v32 = vadd.f32 %v162_v31, %v114_v30  ;;  %v238_v33 = vpop.f32.mrb[3].mxu1 }
 0x1ce   :  { %253 = vtanh.f32 %v163_v32 }
 0x1d6   :  { %v252_v34 = vpop.eup %251 }
 0x1d7   :  { %v180_v36 = vmul.f32 %v252_v34, %v173_v35 }
 0x1d8   :  { %v254_v37 = vpop.eup %253 }
 0x1d9   :  { %v181_v39 = vmul.f32 %v254_v37, %v178_v38  ;;  %v183_v40 = vsel %vm182_vm3, %v180_v36, 0.0 }
 0x1db   :  { %v184_v41 = vsel %vm182_vm3, %v181_v39, 0.0 }
 0x1dc   :  { %v185_v43 = vadd.f32 %v184_v41, %v183_v40 }
 0x1de   :  { %v186_v44 = vrot.slane %v185_v43, 4 }
 0x1e0   :  { %v187_v46 = vadd.f32 %v186_v44, %v185_v43 }
 0x1e2   :  { %v188_v47 = vrot.slane %v187_v46, 2 }
 0x1e4   :  { %v189_v49 = vadd.f32 %v188_v47, %v187_v46 }
 0x1e6   :  { %v190_v51 = vrot.slane %v189_v49, 1 }
 0x1e8   :  { %v191_v53 = vadd.f32 %v190_v51, %v189_v49 }
 0x1ea   :  { %v202_v54 = vadd.f32 %v201_v52, %v191_v53 }
 0x1ec   :  { %204 = vst.msk [vmem:[#allocation3] sm:$0x1] %vm203_vm4, %v202_v54 }
 0x1ed   :  { %266 = shalt.err (!%p263_p4)
}
 0x1ee   :  { %s267_s20 = scalar_lea.hbm %s374_s7, 16 }
 0x1ef   :  { %p268_p5 = scmp.ne.s32.totalorder %s374_s7, %s267_s20  ;;  %p271_p6 = scmp.lt.u32.totalorder %s267_s20, %s374_s7 }
 0x1f1   :  { %p273_p7 = pnand %p271_p6, %p268_p5 }
 0x1f3   :  { %276 = shalt.err (!%p273_p7)
}
 0x1f4   :  { %214 = dma.vmem_to_hbm [thread:$0]  %s212_s5, 16, %s374_s7, [#allocation4]  }
 0x1f5   :  { %277 = dma.done.wait [#allocation4], 16  }
 0x1f6   :  { %278 = vsyncadd [#allocation4], 4294967280 }
 0x1f7   :  { %218 = vsyncpa [#allocation4], 1 }

</bundles_post_ra>
